<compile_context>
chip_gen: v7x
topology: tpu7x:2x2x1
jax: 0.10.0
libtpu: 0.0.40
codegen_flags: <defaults>
</compile_context>

<pallas_src>
import functools
import math

import jax
import jax.numpy as jnp
from jax.experimental import pallas as pl
from jax.experimental.pallas import tpu as pltpu

NUM_STAGE = 4
STAGE_SPLITS = [8, 8, 4, 4]
DEPTH_INTERVAL_RATIO = [0.5, 0.5, 0.5, 0.5]
GROUP_COR_DIM = [8, 8, 8, 8]          # number of correlation groups per stage
FEAT_CHANNELS = [64, 32, 16, 8]       # stage1 (coarse) ... stage4 (fine)


def _vmem_capacity_bytes():
    try:
        return int(pltpu.get_tpu_info().vmem_capacity_bytes)
    except Exception:
        return 64 * 1024 * 1024        # conservative (v7x) default


_VMEM_CAP = _vmem_capacity_bytes()
if _VMEM_CAP >= 100 * 1024 * 1024:     # v5e / v6e: 128 MiB VMEM, low HBM BW -> big tiles
    VMEM_LIMIT_BYTES = 96 * 1024 * 1024
    STAGE_SRC_BLOCK_BYTES = 8 * 1024 * 1024
else:                                   # v7x: 64 MiB VMEM -> tighter caps
    VMEM_LIMIT_BYTES = 40 * 1024 * 1024
    STAGE_SRC_BLOCK_BYTES = 3 * 1024 * 1024


def _pick_tile_128(total_padded, cap):
    """Largest multiple of 128 that divides total_padded (itself a multiple of
    128) and is <= cap; falls back to 128 (never returns a non-128 block)."""
    t = (min(total_padded, max(cap, 128)) // 128) * 128
    while t >= 128:
        if total_padded % t == 0:
            return t
        t -= 128
    return 128


def _pad_last(x, target):
    pad = target - x.shape[-1]
    if pad == 0:
        return x
    cfg = [(0, 0)] * (x.ndim - 1) + [(0, pad)]
    return jnp.pad(x, cfg)


# ----------------------------------------------------------------------------
# Pallas kernel 1: direct 3x3 conv (+bias+relu) via in-kernel im2col.
#   Input is the zero-padded image flattened to (Cin, (H+2)*(W+2)); the patch
#   for tap (dy,dx) is the contiguous lane slice starting at dy*(W+2)+dx, so
#   the conv is 9 accumulated (Cout,Cin)x(Cin,H*(W+2)) bf16 matmuls.  The two
#   junk columns per row (row-boundary wrap) are cropped on the host.
# ----------------------------------------------------------------------------
def _conv3x3_kernel(x_ref, w_ref, b_ref, o_ref, *, H, W):
    Wp = W + 2
    Hw = H * Wp
    cout = o_ref.shape[1]
    acc = jnp.zeros((cout, Hw), jnp.float32)
    for dy in range(3):
        for dx in range(3):
            off = dy * Wp + dx
            patch = x_ref[0, :, off:off + Hw]          # (Cin, Hw) bf16, lane slice
            wtap = w_ref[dy * 3 + dx]                  # (Cout, Cin) bf16
            acc = acc + jnp.dot(wtap, patch, preferred_element_type=jnp.float32)
    o_ref[0] = jnp.maximum(acc + b_ref[...], 0.0).astype(o_ref.dtype)


def conv3x3_relu(x, w, b):
    # x: (N, Cin, H, W)  w: (Cout, Cin, 3, 3)  b: (Cout,) -> (N, Cout, H, W) bf16
    # TODO(synk): for very large images, tile the row axis with a 2-row halo
    # (manual DMA) instead of one whole image per grid step.
    N, Cin, H, W = x.shape
    Cout = w.shape[0]
    Wp = W + 2
    P = (H + 2) * Wp
    Hw = H * Wp
    Ppad = ((P + 2 + 127) // 128) * 128          # +2: last tap reads 2 past P

    xp = jnp.pad(x.astype(jnp.bfloat16), ((0, 0), (0, 0), (1, 1), (1, 1)))
    xflat = _pad_last(xp.reshape(N, Cin, P), Ppad)                  # (N, Cin, Ppad)
    wt = jnp.transpose(w, (2, 3, 0, 1)).reshape(9, Cout, Cin).astype(jnp.bfloat16)
    bm = b.reshape(Cout, 1).astype(jnp.float32)

    out = pl.pallas_call(
        functools.partial(_conv3x3_kernel, H=H, W=W),
        out_shape=jax.ShapeDtypeStruct((N, Cout, Hw), jnp.bfloat16),
        grid=(N,),
        in_specs=[
            pl.BlockSpec((1, Cin, Ppad), lambda n: (n, 0, 0)),
            pl.BlockSpec((9, Cout, Cin), lambda n: (0, 0, 0)),
            pl.BlockSpec((Cout, 1), lambda n: (0, 0)),
        ],
        out_specs=pl.BlockSpec((1, Cout, Hw), lambda n: (n, 0, 0)),
        compiler_params=pltpu.CompilerParams(
            dimension_semantics=("parallel",),
            vmem_limit_bytes=VMEM_LIMIT_BYTES),
    )(xflat, wt, bm)
    # crop the 2 junk columns per row, back to NCHW (cheap 1x-data slice)
    return out.reshape(N, Cout, H, Wp)[:, :, :, :W]


# ----------------------------------------------------------------------------
# Pallas kernel 2: stage regression (lane-dense HW layout, (B, HW) grid)
#   per-view weighted group correlation (bf16 multiply, f32 channel sum) ->
#   masked view mean -> softmax over depth -> expected depth + confidence.
#   Per-view warp volumes / masks are separate inputs (no stacked cost volume).
# ----------------------------------------------------------------------------
def _stage_kernel(*refs, S, D):
    ref_ref = refs[0]
    warp_refs = refs[1:1 + S]                 # each (1, C, D, T) bf16
    msk_refs = refs[1 + S:1 + 2 * S]          # each (1, D, T)   bf16
    dh_ref = refs[1 + 2 * S]                  # (1, D, T) f32
    wc_ref = refs[2 + 2 * S]                  # (C, 1)    f32
    depth_ref = refs[3 + 2 * S]               # (1, 1, T) f32
    conf_ref = refs[4 + 2 * S]                # (1, 1, T) f32

    ref = ref_ref[0].astype(jnp.float32)                     # (C, T)
    wref = (ref * wc_ref[...]).astype(jnp.bfloat16)          # (C, T) bf16

    acc_s = None
    acc_m = None
    for si in range(S):
        w = warp_refs[si][0]                                 # (C, D, T) bf16
        prod = w * wref[:, None, :]                          # bf16 VALU multiply
        sc = jnp.sum(prod, axis=0, dtype=jnp.float32)        # (D, T) f32 accumulate
        m = msk_refs[si][0].astype(jnp.float32)              # (D, T)
        acc_s = sc if acc_s is None else acc_s + sc
        acc_m = m if acc_m is None else acc_m + m

    # Masked mean over source views (invalid warps are zeroed and do not dilute).
    score = acc_s * pl.reciprocal(jnp.maximum(acc_m, 1.0), approx=True)  # (D, T)

    # Softmax over depth hypotheses (depth on sublanes, pixels on lanes).
    mx = jnp.max(score, axis=0, keepdims=True)
    e = jnp.exp(score - mx)
    p = e * pl.reciprocal(jnp.sum(e, axis=0, keepdims=True), approx=True)  # (D, T)

    dh = dh_ref[0]                                           # (D, T)
    depth_ref[0] = jnp.sum(p * dh, axis=0, keepdims=True)    # (1, T)

    # Photometric confidence: 4-hypothesis probability mass around the
    # regressed hypothesis index (CasMVSNet-style).
    d_idx = jax.lax.broadcasted_iota(jnp.int32, p.shape, 0)
    idx_f = jnp.sum(p * d_idx.astype(jnp.float32), axis=0, keepdims=True)
    idx_i = jnp.clip(idx_f, 0.0, float(D - 1)).astype(jnp.int32)
    window = ((d_idx >= idx_i - 1) & (d_idx <= idx_i + 2)).astype(jnp.float32)
    conf_ref[0] = jnp.sum(p * window, axis=0, keepdims=True)


def stage_regression(ref, warps, masks, dh, wc, *, D):
    # ref: (B, C, HWp) bf16; warps: list of (B, C, D, HWp) bf16;
    # masks: list of (B, D, HWp) bf16; dh: (B, D, HWp) f32; wc: (C, 1) f32
    S = len(warps)
    B, C, HWp = ref.shape

    per_pix_bytes = S * C * D * 2                      # bf16 warp bytes per pixel
    cap = max(128, (STAGE_SRC_BLOCK_BYTES // per_pix_bytes) // 128 * 128)
    T = _pick_tile_128(HWp, cap)

    in_specs = [pl.BlockSpec((1, C, T), lambda b, h: (b, 0, h))]
    in_specs += [pl.BlockSpec((1, C, D, T), lambda b, h: (b, 0, 0, h))
                 for _ in range(S)]
    in_specs += [pl.BlockSpec((1, D, T), lambda b, h: (b, 0, h))
                 for _ in range(S)]
    in_specs += [pl.BlockSpec((1, D, T), lambda b, h: (b, 0, h)),
                 pl.BlockSpec((C, 1), lambda b, h: (0, 0))]

    kernel = functools.partial(_stage_kernel, S=S, D=D)
    depth, conf = pl.pallas_call(
        kernel,
        out_shape=(jax.ShapeDtypeStruct((B, 1, HWp), jnp.float32),
                   jax.ShapeDtypeStruct((B, 1, HWp), jnp.float32)),
        grid=(B, HWp // T),
        in_specs=in_specs,
        out_specs=(pl.BlockSpec((1, 1, T), lambda b, h: (b, 0, h)),
                   pl.BlockSpec((1, 1, T), lambda b, h: (b, 0, h))),
        compiler_params=pltpu.CompilerParams(
            dimension_semantics=("parallel", "parallel"),
            vmem_limit_bytes=VMEM_LIMIT_BYTES),
    )(ref, *warps, *masks, dh, wc)
    return depth[:, 0, :], conf[:, 0, :]


# ----------------------------------------------------------------------------
# Plain-JAX glue (projection math, depth scheduling, homography warp)
# ----------------------------------------------------------------------------
def avgpool2(x):
    B, C, H, W = x.shape
    return x.reshape(B, C, H // 2, 2, W // 2, 2).mean(axis=(3, 5))


def encoder_forward(img, params):
    # Approximation of FPNEncoder_selfcross (definition not provided).
    # TODO(synk): FPNEncoder_selfcross / decoder internals are not in the
    # reference source; replaced by a 4-level conv pyramid with channels
    # [8, 16, 32, 64] (stage4 ... stage1), all convs on the Pallas conv kernel.
    f4 = conv3x3_relu(img, params['w1'], params['b1'])            # (N,  8, H,   W)
    f3 = conv3x3_relu(avgpool2(f4), params['w2'], params['b2'])   # (N, 16, H/2, W/2)
    f2 = conv3x3_relu(avgpool2(f3), params['w3'], params['b3'])   # (N, 32, H/4, W/4)
    f1 = conv3x3_relu(avgpool2(f2), params['w4'], params['b4'])   # (N, 64, H/8, W/8)
    return {'stage1': f1, 'stage2': f2, 'stage3': f3, 'stage4': f4}


def compose_projection(proj):
    # proj: (B, V, 2, 4, 4)  -> (B, V, 4, 4)  with [:3,:4] = K @ [R|t]
    ext = proj[:, :, 0]
    K = proj[:, :, 1, :3, :3]
    top = jnp.matmul(K, ext[:, :, :3, :4])
    bottom = ext[:, :, 3:4, :4]
    return jnp.concatenate([top, bottom], axis=2)


def init_range(depth_values, ndepth, H, W):
    B = depth_values.shape[0]
    dmin = depth_values[:, 0]
    dmax = depth_values[:, -1]
    t = jnp.linspace(0.0, 1.0, ndepth, dtype=jnp.float32)
    hypo = dmin[:, None] + (dmax - dmin)[:, None] * t[None]       # (B, D)
    return jnp.broadcast_to(hypo[:, :, None, None], (B, ndepth, H, W))


def schedule_range(cur_depth, ndepth, interval, depth_min, depth_max, H, W):
    # Hypotheses clamped to [depth_min, depth_max].
    B = cur_depth.shape[0]
    cur = jax.image.resize(cur_depth, (B, H, W), method='bilinear')
    half = (ndepth / 2.0) * interval[:, None, None]
    lo = jnp.clip(cur - half, depth_min[:, None, None], depth_max[:, None, None])
    hi = jnp.clip(cur + half, depth_min[:, None, None], depth_max[:, None, None])
    new_interval = (hi - lo) / float(ndepth - 1)                  # (B, H, W)
    steps = jnp.arange(ndepth, dtype=jnp.float32)
    return lo[:, None] + steps[None, :, None, None] * new_interval[:, None]


def homo_warp(src_feat, src_proj, ref_proj, depth_hypo):
    # src_feat: (B, C, H, W) bf16   src_proj/ref_proj: (B, 4, 4)
    # depth_hypo: (B, D, H, W) -> warped features (B, C, D, HW) bf16, mask (B, D, HW) bf16
    # TODO(synk): bilinear grid_sample is a data-dependent gather; fusing it
    # into the stage kernel (scalar-prefetched indices + manual DMA) would
    # remove an HBM round-trip of the cost volume but is left in plain JAX.
    B, C, H, W = src_feat.shape
    D = depth_hypo.shape[1]
    HW = H * W
    proj = jnp.matmul(src_proj, jnp.linalg.inv(ref_proj))
    rot, trans = proj[:, :3, :3], proj[:, :3, 3:4]

    y, x = jnp.meshgrid(jnp.arange(H, dtype=jnp.float32),
                        jnp.arange(W, dtype=jnp.float32), indexing='ij')
    xyz = jnp.stack([x.ravel(), y.ravel(), jnp.ones(HW, jnp.float32)], axis=0)
    rot_xyz = jnp.matmul(rot, xyz[None])                           # (B, 3, HW)
    pts = rot_xyz[:, None] * depth_hypo.reshape(B, D, 1, HW) + trans[:, None]
    z = pts[:, :, 2]
    z_safe = jnp.where(jnp.abs(z) < 1e-6, 1e-6, z)
    px = pts[:, :, 0] / z_safe
    py = pts[:, :, 1] / z_safe                                     # (B, D, HW)

    # validity now also excludes points behind the camera (z <= 0)
    mask = ((px >= 0) & (px <= W - 1) & (py >= 0) & (py <= H - 1) &
            (z > 1e-3)).astype(jnp.float32)                        # (B, D, HW)

    flat = src_feat.reshape(B, C, HW)

    x0 = jnp.floor(px)
    y0 = jnp.floor(py)
    wx1 = px - x0
    wx0 = 1.0 - wx1
    wy1 = py - y0
    wy0 = 1.0 - wy1

    xi0 = jnp.clip(x0, 0, W - 1).astype(jnp.int32)
    xi1 = jnp.clip(x0 + 1.0, 0, W - 1).astype(jnp.int32)
    yi0 = jnp.clip(y0, 0, H - 1).astype(jnp.int32)
    yi1 = jnp.clip(y0 + 1.0, 0, H - 1).astype(jnp.int32)
    vx0 = ((x0 >= 0) & (x0 <= W - 1)).astype(jnp.float32)
    vx1 = ((x0 + 1 >= 0) & (x0 + 1 <= W - 1)).astype(jnp.float32)
    vy0 = ((y0 >= 0) & (y0 <= H - 1)).astype(jnp.float32)
    vy1 = ((y0 + 1 >= 0) & (y0 + 1 <= H - 1)).astype(jnp.float32)

    # Per-batch gather from (C, HW) with (D, HW) indices — no (B,D,C,HW)
    # broadcast of the source features.
    take = jax.vmap(lambda f, i: jnp.take(f, i, axis=1))           # -> (B, C, D, HW)

    out = (take(flat, yi0 * W + xi0).astype(jnp.float32) * (wx0 * wy0 * vx0 * vy0)[:, None]
           + take(flat, yi0 * W + xi1).astype(jnp.float32) * (wx1 * wy0 * vx1 * vy0)[:, None]
           + take(flat, yi1 * W + xi0).astype(jnp.float32) * (wx0 * wy1 * vx0 * vy1)[:, None]
           + take(flat, yi1 * W + xi1).astype(jnp.float32) * (wx1 * wy1 * vx1 * vy1)[:, None])
    out = out * mask[:, None]                                      # zero invalid warps
    return out.astype(jnp.bfloat16), mask.astype(jnp.bfloat16)


# ----------------------------------------------------------------------------
# EIA forward
# ----------------------------------------------------------------------------
def eia_forward(imgs, proj_matrices, depth_values, params):
    V = len(imgs)
    B = imgs[0].shape[0]
    depth_min = depth_values[:, 0]
    depth_max = depth_values[:, -1]

    # Batch all views through the encoder in ONE set of pallas_calls.
    all_imgs = jnp.concatenate(imgs, axis=0)                 # (V*B, 3, H, W)
    feats_all = encoder_forward(all_imgs, params)
    features = [{k: v[vi * B:(vi + 1) * B] for k, v in feats_all.items()}
                for vi in range(V)]
    # TODO(synk): self_p_line_normal_new epipolar-line sampling,
    # P_1to8_FeatureNet_4stage_Decoder_3DCNN, line_cross_enhanced and the
    # reg2d_large cost-regularization UNet are undefined in the reference
    # source; the reg net is approximated by learned per-group weights fused
    # into the Pallas stage kernel.

    outputs = {}
    prev_depth = None
    for s in range(NUM_STAGE):
        key = 'stage{}'.format(s + 1)
        ref_feat = features[0][key]
        _, C, H, W = ref_feat.shape
        HW = H * W
        HWp = ((HW + 127) // 128) * 128
        D = STAGE_SPLITS[s]

        proj_new = compose_projection(proj_matrices[key])     # (B, V, 4, 4)
        ref_proj_new = proj_new[:, 0]

        if s == 0:
            depth_hypo = init_range(depth_values, D, H, W)
        else:
            interval = DEPTH_INTERVAL_RATIO[s] * (depth_max - depth_min) / 192.0
            depth_hypo = schedule_range(prev_depth, D, interval,
                                        depth_min, depth_max, H, W)

        warps, masks = [], []
        for vi in range(1, V):
            wf, wm = homo_warp(features[vi][key], proj_new[:, vi],
                               ref_proj_new, depth_hypo)      # (B,C,D,HW), (B,D,HW)
            warps.append(_pad_last(wf, HWp))
            masks.append(_pad_last(wm, HWp))

        ref = _pad_last(ref_feat.reshape(B, C, HW).astype(jnp.bfloat16), HWp)
        dh = _pad_last(depth_hypo.reshape(B, D, HW), HWp)

        G = GROUP_COR_DIM[s]
        cpg = C // G
        wc = (jnp.repeat(params['group_w'][s], cpg) / float(cpg)).reshape(C, 1)

        depth_flat, conf_flat = stage_regression(ref, warps, masks, dh, wc, D=D)
        depth = depth_flat[:, :HW].reshape(B, H, W)
        conf = conf_flat[:, :HW].reshape(B, H, W)

        outputs_stage = {'depth': depth, 'photometric_confidence': conf}
        outputs[key] = outputs_stage
        outputs.update(outputs_stage)
        prev_depth = depth
    return outputs


# ----------------------------------------------------------------------------
# Deterministic parameter / input construction
# ----------------------------------------------------------------------------
def init_params(key):
    ks = jax.random.split(key, 9)

    def conv_init(k, cout, cin):
        w = jax.random.normal(k, (cout, cin, 3, 3), jnp.float32) / math.sqrt(cin * 9)
        b = jnp.full((cout,), 0.01, jnp.float32)
        return w, b

    w1, b1 = conv_init(ks[0], 8, 3)
    w2, b2 = conv_init(ks[1], 16, 8)
    w3, b3 = conv_init(ks[2], 32, 16)
    w4, b4 = conv_init(ks[3], 64, 32)
    group_w = [1.0 + 0.1 * jax.random.normal(ks[4 + s], (GROUP_COR_DIM[s],), jnp.float32)
               for s in range(NUM_STAGE)]
    return {'w1': w1, 'b1': b1, 'w2': w2, 'b2': b2,
            'w3': w3, 'b3': b3, 'w4': w4, 'b4': b4, 'group_w': group_w}


def make_proj_matrices(B, V, H, W):
    projs = {}
    for s in range(NUM_STAGE):
        scale = 2 ** (NUM_STAGE - 1 - s)        # stage1 -> /8 ... stage4 -> /1
        hs, ws = H // scale, W // scale
        K = jnp.array([[float(ws), 0.0, ws / 2.0],
                       [0.0, float(hs), hs / 2.0],
                       [0.0, 0.0, 1.0]], jnp.float32)
        mats = []
        for v in range(V):
            ext = jnp.eye(4, dtype=jnp.float32).at[0, 3].set(0.08 * v)
            intr = jnp.eye(4, dtype=jnp.float32).at[:3, :3].set(K)
            mats.append(jnp.stack([ext, intr]))
        stage_mat = jnp.stack(mats)[None]                      # (1, V, 2, 4, 4)
        projs['stage{}'.format(s + 1)] = jnp.broadcast_to(stage_mat, (B, V, 2, 4, 4))
    return projs


if __name__ == "__main__":
    B, V, H, W = 2, 3, 16, 16
    key = jax.random.PRNGKey(0)
    k_img, k_par = jax.random.split(key)
    img_keys = jax.random.split(k_img, V)

    imgs = [jax.random.uniform(img_keys[i], (B, 3, H, W), jnp.float32) for i in range(V)]
    depth_values = jnp.broadcast_to(
        jnp.linspace(1.0, 2.0, 48, dtype=jnp.float32)[None], (B, 48))
    proj_matrices = make_proj_matrices(B, V, H, W)
    params = init_params(k_par)

    outputs = eia_forward(imgs, proj_matrices, depth_values, params)
    outputs = jax.block_until_ready(outputs)

    d = outputs['depth']
    assert d.shape == (B, H, W)
    assert bool(jnp.all(jnp.isfinite(d)))
    assert bool(jnp.all(jnp.isfinite(outputs['photometric_confidence'])))
    for s in range(NUM_STAGE):
        ds = outputs['stage{}'.format(s + 1)]['depth']
        assert bool(jnp.all(jnp.isfinite(ds)))
    print("KERNEL_OK")
</pallas_src>

<mosaic_0001>
module attributes {stable_mosaic.version = 11 : i64} {
  func.func @_conv3x3_kernel(%arg0: i32, %arg1: memref<1x3x384xbf16, #tpu.memory_space<vmem>>, %arg2: memref<9x8x3xbf16, #tpu.memory_space<vmem>>, %arg3: memref<8x1xf32, #tpu.memory_space<vmem>>, %arg4: memref<1x8x288xbf16, #tpu.memory_space<vmem>>) attributes {dimension_semantics = [#tpu.dimension_semantics<parallel>], iteration_bounds = array<i64: 6>, scalar_prefetch = 0 : i64, scratch_operands = 0 : i64, tpu.core_type = #tpu.core_type<tc>, window_params = [{transform_indices = @transform_0, window_bounds = array<i64: 1, 3, 384>}, {pipeline_mode = #tpu.pipeline_mode<synchronous>, transform_indices = @transform_1, window_bounds = array<i64: 9, 8, 3>}, {pipeline_mode = #tpu.pipeline_mode<synchronous>, transform_indices = @transform_2, window_bounds = array<i64: 8, 1>}, {transform_indices = @transform_3, window_bounds = array<i64: 1, 8, 288>}]} {
    %cst = arith.constant 0.000000e+00 : f32
    %0 = vector.broadcast %cst : f32 to vector<8x288xf32>
    %c0 = arith.constant 0 : index
    %c0_0 = arith.constant 0 : index
    %c0_1 = arith.constant 0 : index
    %1 = vector.load %arg1[%c0, %c0_0, %c0_1] : memref<1x3x384xbf16, #tpu.memory_space<vmem>>, vector<1x3x288xbf16>
    %2 = vector.shape_cast %1 : vector<1x3x288xbf16> to vector<3x288xbf16>
    %c0_2 = arith.constant 0 : index
    %c0_3 = arith.constant 0 : index
    %c0_4 = arith.constant 0 : index
    %3 = vector.load %arg2[%c0_2, %c0_3, %c0_4] : memref<9x8x3xbf16, #tpu.memory_space<vmem>>, vector<1x8x3xbf16>
    %4 = vector.shape_cast %3 : vector<1x8x3xbf16> to vector<8x3xbf16>
    %cst_5 = arith.constant dense<0.000000e+00> : vector<8x288xf32>
    %5 = tpu.matmul %4, %2, %cst_5 {dimension_numbers = #tpu.dot_dimension_numbers<[1], [0], [0], [1], [0, 0, 1, 1], [], []>} : vector<8x3xbf16>, vector<3x288xbf16>, vector<8x288xf32> -> vector<8x288xf32>
    %6 = arith.addf %0, %5 : vector<8x288xf32>
    %c0_6 = arith.constant 0 : index
    %c0_7 = arith.constant 0 : index
    %c1 = arith.constant 1 : index
    %7 = vector.load %arg1[%c0_6, %c0_7, %c1] : memref<1x3x384xbf16, #tpu.memory_space<vmem>>, vector<1x3x288xbf16>
    %8 = vector.shape_cast %7 : vector<1x3x288xbf16> to vector<3x288xbf16>
    %c1_8 = arith.constant 1 : index
    %c0_9 = arith.constant 0 : index
    %c0_10 = arith.constant 0 : index
    %9 = vector.load %arg2[%c1_8, %c0_9, %c0_10] : memref<9x8x3xbf16, #tpu.memory_space<vmem>>, vector<1x8x3xbf16>
    %10 = vector.shape_cast %9 : vector<1x8x3xbf16> to vector<8x3xbf16>
    %cst_11 = arith.constant dense<0.000000e+00> : vector<8x288xf32>
    %11 = tpu.matmul %10, %8, %cst_11 {dimension_numbers = #tpu.dot_dimension_numbers<[1], [0], [0], [1], [0, 0, 1, 1], [], []>} : vector<8x3xbf16>, vector<3x288xbf16>, vector<8x288xf32> -> vector<8x288xf32>
    %12 = arith.addf %6, %11 : vector<8x288xf32>
    %c0_12 = arith.constant 0 : index
    %c0_13 = arith.constant 0 : index
    %c2 = arith.constant 2 : index
    %13 = vector.load %arg1[%c0_12, %c0_13, %c2] : memref<1x3x384xbf16, #tpu.memory_space<vmem>>, vector<1x3x288xbf16>
    %14 = vector.shape_cast %13 : vector<1x3x288xbf16> to vector<3x288xbf16>
    %c2_14 = arith.constant 2 : index
    %c0_15 = arith.constant 0 : index
    %c0_16 = arith.constant 0 : index
    %15 = vector.load %arg2[%c2_14, %c0_15, %c0_16] : memref<9x8x3xbf16, #tpu.memory_space<vmem>>, vector<1x8x3xbf16>
    %16 = vector.shape_cast %15 : vector<1x8x3xbf16> to vector<8x3xbf16>
    %cst_17 = arith.constant dense<0.000000e+00> : vector<8x288xf32>
    %17 = tpu.matmul %16, %14, %cst_17 {dimension_numbers = #tpu.dot_dimension_numbers<[1], [0], [0], [1], [0, 0, 1, 1], [], []>} : vector<8x3xbf16>, vector<3x288xbf16>, vector<8x288xf32> -> vector<8x288xf32>
    %18 = arith.addf %12, %17 : vector<8x288xf32>
    %c0_18 = arith.constant 0 : index
    %c0_19 = arith.constant 0 : index
    %c18 = arith.constant 18 : index
    %19 = vector.load %arg1[%c0_18, %c0_19, %c18] : memref<1x3x384xbf16, #tpu.memory_space<vmem>>, vector<1x3x288xbf16>
    %20 = vector.shape_cast %19 : vector<1x3x288xbf16> to vector<3x288xbf16>
    %c3 = arith.constant 3 : index
    %c0_20 = arith.constant 0 : index
    %c0_21 = arith.constant 0 : index
    %21 = vector.load %arg2[%c3, %c0_20, %c0_21] : memref<9x8x3xbf16, #tpu.memory_space<vmem>>, vector<1x8x3xbf16>
    %22 = vector.shape_cast %21 : vector<1x8x3xbf16> to vector<8x3xbf16>
    %cst_22 = arith.constant dense<0.000000e+00> : vector<8x288xf32>
    %23 = tpu.matmul %22, %20, %cst_22 {dimension_numbers = #tpu.dot_dimension_numbers<[1], [0], [0], [1], [0, 0, 1, 1], [], []>} : vector<8x3xbf16>, vector<3x288xbf16>, vector<8x288xf32> -> vector<8x288xf32>
    %24 = arith.addf %18, %23 : vector<8x288xf32>
    %c0_23 = arith.constant 0 : index
    %c0_24 = arith.constant 0 : index
    %c19 = arith.constant 19 : index
    %25 = vector.load %arg1[%c0_23, %c0_24, %c19] : memref<1x3x384xbf16, #tpu.memory_space<vmem>>, vector<1x3x288xbf16>
    %26 = vector.shape_cast %25 : vector<1x3x288xbf16> to vector<3x288xbf16>
    %c4 = arith.constant 4 : index
    %c0_25 = arith.constant 0 : index
    %c0_26 = arith.constant 0 : index
    %27 = vector.load %arg2[%c4, %c0_25, %c0_26] : memref<9x8x3xbf16, #tpu.memory_space<vmem>>, vector<1x8x3xbf16>
    %28 = vector.shape_cast %27 : vector<1x8x3xbf16> to vector<8x3xbf16>
    %cst_27 = arith.constant dense<0.000000e+00> : vector<8x288xf32>
    %29 = tpu.matmul %28, %26, %cst_27 {dimension_numbers = #tpu.dot_dimension_numbers<[1], [0], [0], [1], [0, 0, 1, 1], [], []>} : vector<8x3xbf16>, vector<3x288xbf16>, vector<8x288xf32> -> vector<8x288xf32>
    %30 = arith.addf %24, %29 : vector<8x288xf32>
    %c0_28 = arith.constant 0 : index
    %c0_29 = arith.constant 0 : index
    %c20 = arith.constant 20 : index
    %31 = vector.load %arg1[%c0_28, %c0_29, %c20] : memref<1x3x384xbf16, #tpu.memory_space<vmem>>, vector<1x3x288xbf16>
    %32 = vector.shape_cast %31 : vector<1x3x288xbf16> to vector<3x288xbf16>
    %c5 = arith.constant 5 : index
    %c0_30 = arith.constant 0 : index
    %c0_31 = arith.constant 0 : index
    %33 = vector.load %arg2[%c5, %c0_30, %c0_31] : memref<9x8x3xbf16, #tpu.memory_space<vmem>>, vector<1x8x3xbf16>
    %34 = vector.shape_cast %33 : vector<1x8x3xbf16> to vector<8x3xbf16>
    %cst_32 = arith.constant dense<0.000000e+00> : vector<8x288xf32>
    %35 = tpu.matmul %34, %32, %cst_32 {dimension_numbers = #tpu.dot_dimension_numbers<[1], [0], [0], [1], [0, 0, 1, 1], [], []>} : vector<8x3xbf16>, vector<3x288xbf16>, vector<8x288xf32> -> vector<8x288xf32>
    %36 = arith.addf %30, %35 : vector<8x288xf32>
    %c0_33 = arith.constant 0 : index
    %c0_34 = arith.constant 0 : index
    %c36 = arith.constant 36 : index
    %37 = vector.load %arg1[%c0_33, %c0_34, %c36] : memref<1x3x384xbf16, #tpu.memory_space<vmem>>, vector<1x3x288xbf16>
    %38 = vector.shape_cast %37 : vector<1x3x288xbf16> to vector<3x288xbf16>
    %c6 = arith.constant 6 : index
    %c0_35 = arith.constant 0 : index
    %c0_36 = arith.constant 0 : index
    %39 = vector.load %arg2[%c6, %c0_35, %c0_36] : memref<9x8x3xbf16, #tpu.memory_space<vmem>>, vector<1x8x3xbf16>
    %40 = vector.shape_cast %39 : vector<1x8x3xbf16> to vector<8x3xbf16>
    %cst_37 = arith.constant dense<0.000000e+00> : vector<8x288xf32>
    %41 = tpu.matmul %40, %38, %cst_37 {dimension_numbers = #tpu.dot_dimension_numbers<[1], [0], [0], [1], [0, 0, 1, 1], [], []>} : vector<8x3xbf16>, vector<3x288xbf16>, vector<8x288xf32> -> vector<8x288xf32>
    %42 = arith.addf %36, %41 : vector<8x288xf32>
    %c0_38 = arith.constant 0 : index
    %c0_39 = arith.constant 0 : index
    %c37 = arith.constant 37 : index
    %43 = vector.load %arg1[%c0_38, %c0_39, %c37] : memref<1x3x384xbf16, #tpu.memory_space<vmem>>, vector<1x3x288xbf16>
    %44 = vector.shape_cast %43 : vector<1x3x288xbf16> to vector<3x288xbf16>
    %c7 = arith.constant 7 : index
    %c0_40 = arith.constant 0 : index
    %c0_41 = arith.constant 0 : index
    %45 = vector.load %arg2[%c7, %c0_40, %c0_41] : memref<9x8x3xbf16, #tpu.memory_space<vmem>>, vector<1x8x3xbf16>
    %46 = vector.shape_cast %45 : vector<1x8x3xbf16> to vector<8x3xbf16>
    %cst_42 = arith.constant dense<0.000000e+00> : vector<8x288xf32>
    %47 = tpu.matmul %46, %44, %cst_42 {dimension_numbers = #tpu.dot_dimension_numbers<[1], [0], [0], [1], [0, 0, 1, 1], [], []>} : vector<8x3xbf16>, vector<3x288xbf16>, vector<8x288xf32> -> vector<8x288xf32>
    %48 = arith.addf %42, %47 : vector<8x288xf32>
    %c0_43 = arith.constant 0 : index
    %c0_44 = arith.constant 0 : index
    %c38 = arith.constant 38 : index
    %49 = vector.load %arg1[%c0_43, %c0_44, %c38] : memref<1x3x384xbf16, #tpu.memory_space<vmem>>, vector<1x3x288xbf16>
    %50 = vector.shape_cast %49 : vector<1x3x288xbf16> to vector<3x288xbf16>
    %c8 = arith.constant 8 : index
    %c0_45 = arith.constant 0 : index
    %c0_46 = arith.constant 0 : index
    %51 = vector.load %arg2[%c8, %c0_45, %c0_46] : memref<9x8x3xbf16, #tpu.memory_space<vmem>>, vector<1x8x3xbf16>
    %52 = vector.shape_cast %51 : vector<1x8x3xbf16> to vector<8x3xbf16>
    %cst_47 = arith.constant dense<0.000000e+00> : vector<8x288xf32>
    %53 = tpu.matmul %52, %50, %cst_47 {dimension_numbers = #tpu.dot_dimension_numbers<[1], [0], [0], [1], [0, 0, 1, 1], [], []>} : vector<8x3xbf16>, vector<3x288xbf16>, vector<8x288xf32> -> vector<8x288xf32>
    %54 = arith.addf %48, %53 : vector<8x288xf32>
    %c0_48 = arith.constant 0 : index
    %c0_49 = arith.constant 0 : index
    %55 = vector.load %arg3[%c0_48, %c0_49] : memref<8x1xf32, #tpu.memory_space<vmem>>, vector<8x1xf32>
    %56 = vector.broadcast %55 : vector<8x1xf32> to vector<8x288xf32>
    %57 = arith.addf %54, %56 : vector<8x288xf32>
    %cst_50 = arith.constant 0.000000e+00 : f32
    %58 = vector.broadcast %cst_50 : f32 to vector<8x288xf32>
    %59 = arith.maximumf %57, %58 : vector<8x288xf32>
    %60 = arith.truncf %59 : vector<8x288xf32> to vector<8x288xbf16>
    %c0_51 = arith.constant 0 : index
    %c0_52 = arith.constant 0 : index
    %c0_53 = arith.constant 0 : index
    %61 = vector.load %arg4[%c0_51, %c0_52, %c0_53] : memref<1x8x288xbf16, #tpu.memory_space<vmem>>, vector<1x8x288xbf16>
    %62 = vector.shape_cast %61 : vector<1x8x288xbf16> to vector<8x288xbf16>
    %63 = vector.shape_cast %60 : vector<8x288xbf16> to vector<1x8x288xbf16>
    tpu.vector_store %arg4[%c0_51, %c0_52, %c0_53], %63 {strides = array<i32>} : memref<1x8x288xbf16, #tpu.memory_space<vmem>>, vector<1x8x288xbf16>,
    return
  }
  func.func @transform_0(%arg0: i32) -> (i32, i32, i32) {
    %c0_i32 = arith.constant 0 : i32
    %c0_i32_0 = arith.constant 0 : i32
    %c0_i32_1 = arith.constant 0 : i32
    return %arg0, %c0_i32, %c0_i32_0 : i32, i32, i32
  }
  func.func @transform_1(%arg0: i32) -> (i32, i32, i32) {
    %c0_i32 = arith.constant 0 : i32
    %c0_i32_0 = arith.constant 0 : i32
    %c0_i32_1 = arith.constant 0 : i32
    %c0_i32_2 = arith.constant 0 : i32
    return %c0_i32, %c0_i32_0, %c0_i32_1 : i32, i32, i32
  }
  func.func @transform_2(%arg0: i32) -> (i32, i32) {
    %c0_i32 = arith.constant 0 : i32
    %c0_i32_0 = arith.constant 0 : i32
    %c0_i32_1 = arith.constant 0 : i32
    return %c0_i32, %c0_i32_0 : i32, i32
  }
  func.func @transform_3(%arg0: i32) -> (i32, i32, i32) {
    %c0_i32 = arith.constant 0 : i32
    %c0_i32_0 = arith.constant 0 : i32
    %c0_i32_1 = arith.constant 0 : i32
    return %arg0, %c0_i32, %c0_i32_0 : i32, i32, i32
  }
}

</mosaic_0001>

<bundles_post_ra>
// kernel: tpu_custom_call.1
= control target key start
LH: loop header
LB: loop body
LE: loop exit
PB: predicated region body
PF: predicated region fallthrough
CT: control target
= control target key end

     0   :  { %8 = vsyncpa [#allocation3], 0  ;;  %s1914_s0 = inlined_call_operand.vmem [shape: bf16[6,3,384], index: 0, kind: input, shape index: {}]   ;;  %s1915_s1 = inlined_call_operand.vmem [shape: bf16[9,8,3], index: 1, kind: input, shape index: {}]   ;;  %s1916_s2 = inlined_call_operand.vmem [shape: f32[8,1], index: 2, kind: input, shape index: {}]   ;;  %s1917_s3 = inlined_call_operand.hbm [shape: bf16[6,8,288], index: 3, kind: output, shape index: {}]  }
   0x1   :  { %10 = vsyncpa [#allocation3 + $0x1], 0  ;;  %s1640_s12 = smov 0   ;;  %s1642_s13 = smov 0  }
   0x2   :  { %s1644_s14 = smov 0   ;;  %s1646_s15 = smov 0  }
   0x3 LB: > { %s1661_s16 = sadd.s32 4294967295, %s1604_s15   ;;  %s1368_s17 = sadd.s32 4294967294, %s1604_s15   ;;  %s1604_s15 = sphi %s1646_s15, %s1923_s15   ;;  %s1600_s14 = sphi %s1644_s14, %s1922_s14   ;;  %s1596_s13 = sphi %s1642_s13, %s1921_s13   ;;  %s1592_s12 = sphi %s1640_s12, %s1920_s12  }
   0x4   : > { %s1665_s18 = sadd.s32 1, %s1604_s15   ;;  %s91_s19 = sadd.s32 1, %s1600_s14 }
   0x5   : > { %s88_s20 = ssub.s32 %s1604_s15, %s1665_s18  ;;  %p101_p0 = scmp.ne.s32.totalorder %s1600_s14, %s1596_s13 }
   0x6   : > { %p89_p1 = scmp.eq.s32.totalorder %s88_s20, 0  ;;  %p102_p2 = scmp.eq.s32.totalorder %s1661_s16, 5 }
   0x7   : > { %p107_p3 = scmp.ne.s32.totalorder %s1596_s13, %s1592_s12  ;;  %p108_p4 = scmp.eq.s32.totalorder %s1368_s17, 5 }
   0x8   : > { %s1676_s21 = scalar_select %p89_p1, %s1600_s14, %s91_s19  }
   0x9   : > { %p1678_p5 = por %p102_p2, %p101_p0  ;;  %p1682_p6 = por %p108_p4, %p107_p3 }
   0xa   : > { %p1371_p7 = scmp.ge.s32.totalorder %s1604_s15, 1  ;;  %p140_p8 = scmp.lt.s32.totalorder %s1604_s15, 7 }
   0xc   : > { %p141_p9 = pnand %p1371_p7, %p140_p8 }
   0xd   : > { %p164_p10 = scmp.lt.s32.totalorder (!%p141_p9), %s1661_s16, 5  ;;  %v179_v0 = vlaneseq (!%p141_p9)  ;;  %v1606_v1 = vmov (!%p141_p9), 1983009808   ;;  %v1607_v5 = vmov (!%p141_p9), 0.0   ;;  %vm1608_vm0 = vmmov (!%p141_p9), 0   ;;  %s1609_s29 = smov (!%p141_p9), 127  }
   0xe   : > { %144 = sbr.rel (%p141_p9) target bundleno = 456 (0x1c8), region = 32  ;;  %v177_v2 = vunpack.c.l.s4 (!%p141_p9), %v1606_v1  ;;  %1424 = vmatprep.subr.bf16.mxu1 (!%p141_p9), %v1607_v5  ;;  %1426 = vmatprep.mubr.msk.bf16.mxu1 (!%p141_p9), %vm1608_vm0, %v1607_v5  ;;  %s1610_s30 = smov (!%p141_p9), 126   ;;  %v1611_v21 = vmov (!%p141_p9), 0   ;;  %v1266_v48 = vld [vmem:[%s1916_s2] sm:$0xff] (!%p141_p9)  ;;  %vm204_vm1 = vcmask (!%p141_p9), 1040384   ;;  %vm205_vm2 = vcmask (!%p141_p9), 1041408  }
   0xf   : > { %v180_v3 = vshrl.u32 (!%p141_p9), %v179_v0, 7  ;;  %249 = vmatprep.mubr.bf16.mxu0 (!%p141_p9), %v1611_v21  ;;  %1533 = vset.pattern.permute.xlu0 (!%p141_p9), %v1611_v21  ;;  %s1612_s4 = smov (!%p141_p9), 110   ;;  %s1613_s5 = smov (!%p141_p9), 109   ;;  %v1618_v51 = vmov (!%p141_p9), 65535   ;;  %vm197_vm3 = vcmask (!%p141_p9), 1039360   ;;  %vm417_vm4 = vcmask (!%p141_p9), 1031168  }
  0x10   : > { %v178_v4 = vunpack.c.0.s8 (!%p141_p9), %v177_v2  ;;  %s1614_s6 = smov (!%p141_p9), 108   ;;  %s1615_s7 = smov (!%p141_p9), 92   ;;  %v206_v52 = vsel (!%p141_p9), %vm204_vm1, 4294967295, %v1618_v51  ;;  %v1373_v63 = vld [vmem:[%s1915_s1 + $0x4] sm:$0xf] (!%p141_p9)  ;;  %vm200_vm5 = vcmask (!%p141_p9), 23552  }
  0x11   : > { %s1616_s8 = smov (!%p141_p9), 91   ;;  %s1617_s9 = smov (!%p141_p9), 90   ;;  %v1740_v54 = vsel (!%p141_p9), %vm205_vm2, %v206_v52, 0  ;;  %vm542_vm6 = vcmask (!%p141_p9), 900096   ;;  %vm667_vm7 = vcmask (!%p141_p9), 891904   ;;  %vm792_vm8 = vcmask (!%p141_p9), 883712  }
  0x12   : > { %v1691_v6 = vsub.s32 (!%p141_p9), %v178_v4, %v180_v3  ;;  %vm917_vm9 = vcmask (!%p141_p9), 752640   ;;  %vm1042_vm10 = vcmask (!%p141_p9), 744448   ;;  %vm1167_vm11 = vcmask (!%p141_p9), 736256   ;;  %s161_s17 = sand.u32 (!%p141_p9), 1, %s1596_s13   ;;  %s1480_s20 = smul.u32 (!%p141_p9), 192, %s1661_s16 }
  0x13   : > { %s1478_s19 = smul.u32 (!%p141_p9), 12, %s161_s17  ;;  %vm1292_vm12 = vcmask (!%p141_p9), 257024  }
  0x15   : > { %s165_s24 = scalar_select %p164_p10, %s1661_s16, 5 }
  0x16   : > { %s1295_s16 = scalar_lea.sflag [#allocation3], %s161_s17 }
  0x17   : > { %s1479_s25 = smul.u32 6, %s165_s24  ;;  %s163_s24 = scalar_lea.vmem [#allocation2], %s1478_s19 }
  0x19   : > { %s1696_s28 = scalar_lea.vmem %s1914_s0, %s1479_s25  ;;  %s1309_s25 = sshll.u32 %s163_s24, 4  ;;  %s1872_s25 = int_to_ptr.vmem [resolvable:$true] %s1309_s25 }
  0x1a   : > { %v170_v7 = vld [vmem:[%s1696_s28] sm:$0x3f] }
  0x1b   : > { %v391_v8 = vld [vmem:[%s1696_s28] sm:$0x3f]  ;;  %v1703_v9 = vrot.slane %v170_v7, %v1691_v6  ;;  %v175_v10 = vcombine.high %v170_v7, %v170_v7 }
  0x1c   : > { %v402_v11 = vrot.slane %v391_v8, %v1691_v6  ;;  %v395_v15 = vcombine.high %v391_v8, %v391_v8  ;;  %v516_v16 = vld [vmem:[%s1696_s28] sm:$0x3f] }
  0x1d   : > { %191 = vrot.lane.b32.xlu1 %v1703_v9, %s1609_s29  ;;  %v1709_v12 = vcombine.high %v1703_v9, %v1703_v9  ;;  %v1713_v14 = vrot.slane %v175_v10, %v1691_v6  ;;  %v520_v17 = vcombine.high %v516_v16, %v516_v16  ;;  %v641_v18 = vld [vmem:[%s1696_s28] sm:$0x3f]  ;;  %v527_v20 = vrot.slane %v516_v16, %v1691_v6 }
  0x1e   : > { %v410_v13 = vcombine.high %v402_v11, %v402_v11  ;;  %v409_v19 = vrot.slane %v395_v15, %v1691_v6  ;;  %v652_v23 = vrot.slane %v641_v18, %v1691_v6  ;;  %v645_v26 = vcombine.high %v641_v18, %v641_v18  ;;  %v766_v27 = vld [vmem:[%s1696_s28] sm:$0x3f] }
  0x1f   : > { %193 = vrot.lane.b32.xlu0 %v1709_v12, %s1609_s29  ;;  %v534_v22 = vrot.slane %v520_v17, %v1691_v6  ;;  %v535_v24 = vcombine.high %v527_v20, %v527_v20  ;;  %v770_v28 = vcombine.high %v766_v27, %v766_v27  ;;  %v891_v29 = vld [vmem:[%s1696_s28] sm:$0x3f]  ;;  %v777_v31 = vrot.slane %v766_v27, %v1691_v6 }
  0x20   : > { %v660_v25 = vcombine.high %v652_v23, %v652_v23  ;;  %v659_v30 = vrot.slane %v645_v26, %v1691_v6  ;;  %v902_v33 = vrot.slane %v891_v29, %v1691_v6  ;;  %v895_v36 = vcombine.high %v891_v29, %v891_v29  ;;  %v1016_v37 = vld [vmem:[%s1696_s28] sm:$0x3f]  ;;  %v1381_v29 = vld [vmem:[%s1915_s1 + $0xc] sm:$0xf] }
  0x21   : > { %413 = vrot.lane.b32.xlu1 %v410_v13, %s1610_s30  ;;  %v784_v32 = vrot.slane %v770_v28, %v1691_v6  ;;  %v785_v34 = vcombine.high %v777_v31, %v777_v31  ;;  %v1020_v38 = vcombine.high %v1016_v37, %v1016_v37  ;;  %v1141_v39 = vld [vmem:[%s1696_s28] sm:$0x3f]  ;;  %v1027_v41 = vrot.slane %v1016_v37, %v1691_v6  ;;  %s1870_s28 = scalar_lea.hbm %s1917_s3, %s1480_s20 }
  0x22   : > { %v910_v35 = vcombine.high %v902_v33, %v902_v33  ;;  %v909_v40 = vrot.slane %v895_v36, %v1691_v6  ;;  %v1152_v43 = vrot.slane %v1141_v39, %v1691_v6  ;;  %v1145_v46 = vcombine.high %v1141_v39, %v1141_v39  ;;  %v171_v10 = vld [vmem:[%s1915_s1] sm:$0xf] }
  0x23   : > { %195 = vrot.lane.b32.xlu0 %v1713_v14, %s1609_s29  ;;  %v1034_v42 = vrot.slane %v1020_v38, %v1691_v6  ;;  %v1035_v44 = vcombine.high %v1027_v41, %v1027_v41  ;;  %v305_v59 = vand.u32 %v1740_v54, %v1709_v12  ;;  %v308_v61 = vand.u32 %v1740_v54, %v1713_v14  ;;  %v1384_v38 = vld [vmem:[%s1915_s1 + $0x10] sm:$0xf]  ;;  %s1542_s29 = scalar_lea.vmem %s1872_s25, 192 }
  0x24   : > { %v1160_v45 = vcombine.high %v1152_v43, %v1152_v43  ;;  %v1159_v47 = vrot.slane %v1145_v46, %v1691_v6  ;;  %v302_v2 = vand.u32 %v1740_v54, %v1703_v9  ;;  %p1543_p11 = scmp.ne.s32.totalorder %s1872_s25, %s1542_s29 }
  0x25   : > { %411 = vrot.lane.b32.xlu1 %v402_v11, %s1610_s30 }
  0x26   : > { %p1544_p12 = pnand %p1543_p11, %p1678_p5 }
  0x27   : > { %415 = vrot.lane.b32.xlu0 %v409_v19, %s1610_s30  ;;  %v1378_v19 = vld [vmem:[%s1915_s1 + $0x8] sm:$0xf]  ;;  %s1619_s30 = smov [#allocation2]  }
  0x28   : > { %p1545_p13 = pneg %p1544_p12 }
  0x29   : > { %540 = vrot.lane.b32.xlu1 %v534_v22, %s1612_s4 }
  0x2b   : > { %538 = vrot.lane.b32.xlu0 %v535_v24, %s1612_s4 }
  0x2d   : > { %663 = vrot.lane.b32.xlu1 %v660_v25, %s1613_s5 }
  0x2f   : > { %536 = vrot.lane.b32.xlu0 %v527_v20, %s1612_s4  ;;  %s1546_s4 = sshll.u32 %s1619_s30, 4  ;;  %s1547_s4 = int_to_ptr.vmem [resolvable:$false] %s1546_s4 }
  0x30   : > { %p1549_p0 = scmp.lt.s32.totalorder %s1872_s25, %s1547_s4 }
  0x31   : > { %661 = vrot.lane.b32.xlu1 %v652_v23, %s1613_s5 }
  0x33   : > { %665 = vrot.lane.b32.xlu0 %v659_v30, %s1613_s5  ;;  %s1548_s5 = scalar_lea.vmem %s1547_s4, 384 }
  0x34   : > { %p1550_p1 = scmp.lt.s32.totalorder %s1548_s5, %s1542_s29 }
  0x35   : > { %790 = vrot.lane.b32.xlu1 %v784_v32, %s1614_s6 }
  0x36   : > { %p1551_p2 = por %p1550_p1, %p1549_p0 }
  0x37   : > { %788 = vrot.lane.b32.xlu0 %v785_v34, %s1614_s6 }
  0x38   : > { %p1552_p3 = pnand %p1551_p2, %p1545_p13 }
  0x39   : > { %913 = vrot.lane.b32.xlu1 %v910_v35, %s1615_s7 }
  0x3b   : > { %786 = vrot.lane.b32.xlu0 %v777_v31, %s1614_s6 }
  0x3d   : > { %911 = vrot.lane.b32.xlu1 %v902_v33, %s1615_s7 }
  0x3f   : > { %915 = vrot.lane.b32.xlu0 %v909_v40, %s1615_s7 }
  0x41   : > { %1040 = vrot.lane.b32.xlu1 %v1034_v42, %s1616_s8 }
  0x43   : > { %1038 = vrot.lane.b32.xlu0 %v1035_v44, %s1616_s8 }
  0x45   : > { %1163 = vrot.lane.b32.xlu1 %v1160_v45, %s1617_s9 }
  0x47   : > { %1036 = vrot.lane.b32.xlu0 %v1027_v41, %s1616_s8 }
  0x49   : > { %1161 = vrot.lane.b32.xlu1 %v1152_v43, %s1617_s9 }
  0x4b   : > { %1165 = vrot.lane.b32.xlu0 %v1159_v47, %s1617_s9  ;;  %v1387_v47 = vld [vmem:[%s1915_s1 + $0x14] sm:$0xf] }
  0x4f   : > { %1269 = vperm.xlu0 %1533, %v1266_v48  }
  0x8f   : > { %v192_v49 = vpop.permute.xlu1 %191 }
  0x91   : > { %v194_v50 = vpop.permute.xlu0 %193 }
  0x92   : > { %v198_v55 = vsel %vm197_vm3, %v192_v49, %v194_v50 }
  0x93   : > { %v414_v53 = vpop.permute.xlu1 %413  ;;  %v209_v62 = vand.u32 %v1740_v54, %v198_v55 }
  0x95   : > { %v196_v56 = vpop.permute.xlu0 %195 }
  0x96   : > { %v215_v57 = vand.u32 %v1740_v54, %v196_v56  ;;  %v199_v58 = vsel %vm197_vm3, %v194_v50, %v196_v56 }
  0x97   : > { %v212_v60 = vand.u32 %v1740_v54, %v199_v58  ;;  %v412_v0 = vpop.permute.xlu1 %411 }
  0x98   : > { %1425 = vmatpush3.bf16.msra.mxu1 %v215_v57  ;;  %v418_v8 = vsel %vm417_vm4, %v412_v0, %v414_v53  ;;  %v1390_v57 = vld [vmem:[%s1915_s1 + $0x18] sm:$0xf]  ;;  %v1393_v0 = vld [vmem:[%s1915_s1 + $0x1c] sm:$0xf] }
  0x99   : > { %217 = vmatprep.subr.bf16.mxu0 %v212_v60  ;;  %1430 = vmatprep.subr.bf16.mxu1 %v1607_v5  ;;  %v416_v1 = vpop.permute.xlu0 %415  ;;  %v424_v13 = vand.u32 %v418_v8, %v1740_v54 }
  0x9a   : > { %218 = vmatpush1.bf16.msra.mxu0 %v209_v62  ;;  %v419_v3 = vsel %vm417_vm4, %v414_v53, %v416_v1  ;;  %v430_v9 = vand.u32 %v416_v1, %v1740_v54 }
  0x9b   : > { %1427 = vmatmul.mubr.msk.bf16.vlgmr.msra.gmra.mrb[0].mxu1 %vm200_vm5, %v1373_v63  ;;  %310 = vmatprep.subr.bf16.mxu0 %v305_v59  ;;  %v427_v4 = vand.u32 %v419_v3, %v1740_v54  ;;  %v541_v7 = vpop.permute.xlu1 %540 }
  0x9c   : > { %1431 = vmatpush3.bf16.msra.mxu1 %v308_v61  ;;  %1432 = vmatprep.mubr.msk.bf16.mxu1 %vm1608_vm0, %v1607_v5  ;;  %v555_v18 = vand.u32 %v541_v7, %v1740_v54 }
  0x9d   : > { %1374 = vmatmul.mubr.msk.bf16.vlgmr.msra.gmra.mrb[0].mxu0 %vm200_vm5, %v1373_v63  ;;  %v539_v6 = vpop.permute.xlu0 %538  ;;  %1436 = vmatprep.subr.bf16.mxu1 %v1607_v5 }
  0x9e   : > { %311 = vmatpush1.bf16.msra.mxu0 %v302_v2  ;;  %342 = vmatprep.mubr.bf16.mxu0 %v1611_v21  ;;  %v544_v11 = vsel %vm542_vm6, %v539_v6, %v541_v7  ;;  %v1396_v2 = vld [vmem:[%s1915_s1 + $0x20] sm:$0xf] }
  0x9f   : > { %432 = vmatprep.subr.bf16.mxu0 %v427_v4  ;;  %v552_v14 = vand.u32 %v544_v11, %v1740_v54  ;;  %v664_v15 = vpop.permute.xlu1 %663 }
  0xa1   : > { %v537_v12 = vpop.permute.xlu0 %536 }
  0xa2   : > { %v543_v17 = vsel %vm542_vm6, %v537_v12, %v539_v6 }
  0xa3   : > { %1433 = vmatmul.mubr.msk.bf16.vlgmr.msra.gmra.mrb[4].mxu1 %vm200_vm5, %v171_v10  ;;  %v662_v22 = vpop.permute.xlu1 %661  ;;  %v549_v23 = vand.u32 %v543_v17, %v1740_v54 }
  0xa4   : > { %1437 = vmatpush3.bf16.msra.mxu1 %v430_v9  ;;  %1438 = vmatprep.mubr.msk.bf16.mxu1 %vm1608_vm0, %v1607_v5  ;;  %v668_v27 = vsel %vm667_vm7, %v662_v22, %v664_v15 }
  0xa5   : > { %1376 = vmatmul.mubr.msk.bf16.vlgmr.msra.gmra.mrb[4].mxu0 %vm200_vm5, %v171_v10  ;;  %1442 = vmatprep.subr.bf16.mxu1 %v1607_v5  ;;  %v666_v16 = vpop.permute.xlu0 %665  ;;  %v674_v32 = vand.u32 %v668_v27, %v1740_v54 }
  0xa6   : > { %433 = vmatpush1.bf16.msra.mxu0 %v424_v13  ;;  %464 = vmatprep.mubr.bf16.mxu0 %v1611_v21  ;;  %v669_v20 = vsel %vm667_vm7, %v664_v15, %v666_v16  ;;  %v680_v28 = vand.u32 %v666_v16, %v1740_v54 }
  0xa7   : > { %557 = vmatprep.subr.bf16.mxu0 %v552_v14  ;;  %v677_v24 = vand.u32 %v669_v20, %v1740_v54  ;;  %v791_v26 = vpop.permute.xlu1 %790 }
  0xa8   : > { %v805_v37 = vand.u32 %v791_v26, %v1740_v54 }
  0xa9   : > { %v789_v25 = vpop.permute.xlu0 %788 }
  0xaa   : > { %v794_v30 = vsel %vm792_vm8, %v789_v25, %v791_v26 }
  0xab   : > { %1439 = vmatmul.mubr.msk.bf16.vlgmr.msra.gmra.mrb[8].mxu1 %vm200_vm5, %v1378_v19  ;;  %v802_v33 = vand.u32 %v794_v30, %v1740_v54  ;;  %v914_v34 = vpop.permute.xlu1 %913 }
  0xac   : > { %1443 = vmatpush3.bf16.msra.mxu1 %v555_v18  ;;  %1444 = vmatprep.mubr.msk.bf16.mxu1 %vm1608_vm0, %v1607_v5 }
  0xad   : > { %1379 = vmatmul.mubr.msk.bf16.vlgmr.msra.gmra.mrb[8].mxu0 %vm200_vm5, %v1378_v19  ;;  %1448 = vmatprep.subr.bf16.mxu1 %v1607_v5  ;;  %v787_v31 = vpop.permute.xlu0 %786 }
  0xae   : > { %558 = vmatpush1.bf16.msra.mxu0 %v549_v23  ;;  %589 = vmatprep.mubr.bf16.mxu0 %v1611_v21  ;;  %v793_v36 = vsel %vm792_vm8, %v787_v31, %v789_v25 }
  0xaf   : > { %682 = vmatprep.subr.bf16.mxu0 %v677_v24  ;;  %v912_v40 = vpop.permute.xlu1 %911  ;;  %v799_v41 = vand.u32 %v793_v36, %v1740_v54 }
  0xb0   : > { %v918_v45 = vsel %vm917_vm9, %v912_v40, %v914_v34 }
  0xb1   : > { %v916_v35 = vpop.permute.xlu0 %915  ;;  %v924_v50 = vand.u32 %v918_v45, %v1740_v54 }
  0xb2   : > { %v919_v39 = vsel %vm917_vm9, %v914_v34, %v916_v35  ;;  %v930_v46 = vand.u32 %v916_v35, %v1740_v54 }
  0xb3   : > { %1445 = vmatmul.mubr.msk.bf16.vlgmr.msra.gmra.mrb[12].mxu1 %vm200_vm5, %v1381_v29  ;;  %v927_v42 = vand.u32 %v919_v39, %v1740_v54  ;;  %v1041_v44 = vpop.permute.xlu1 %1040 }
  0xb4   : > { %1449 = vmatpush3.bf16.msra.mxu1 %v680_v28  ;;  %1450 = vmatprep.mubr.msk.bf16.mxu1 %vm1608_vm0, %v1607_v5  ;;  %v1055_v56 = vand.u32 %v1041_v44, %v1740_v54 }
  0xb5   : > { %1382 = vmatmul.mubr.msk.bf16.vlgmr.msra.gmra.mrb[12].mxu0 %vm200_vm5, %v1381_v29  ;;  %1454 = vmatprep.subr.bf16.mxu1 %v1607_v5  ;;  %v1039_v43 = vpop.permute.xlu0 %1038 }
  0xb6   : > { %683 = vmatpush1.bf16.msra.mxu0 %v674_v32  ;;  %714 = vmatprep.mubr.bf16.mxu0 %v1611_v21  ;;  %v1044_v48 = vsel %vm1042_vm10, %v1039_v43, %v1041_v44 }
  0xb7   : > { %807 = vmatprep.subr.bf16.mxu0 %v802_v33  ;;  %v1052_v51 = vand.u32 %v1044_v48, %v1740_v54  ;;  %v1164_v53 = vpop.permute.xlu1 %1163 }
  0xb9   : > { %v1037_v49 = vpop.permute.xlu0 %1036 }
  0xba   : > { %v1043_v55 = vsel %vm1042_vm10, %v1037_v49, %v1039_v43 }
  0xbb   : > { %1451 = vmatmul.mubr.msk.bf16.vlgmr.msra.gmra.mrb[16].mxu1 %vm200_vm5, %v1384_v38  ;;  %v1049_v59 = vand.u32 %v1043_v55, %v1740_v54  ;;  %v1162_v61 = vpop.permute.xlu1 %1161 }
  0xbc   : > { %1455 = vmatpush3.bf16.msra.mxu1 %v805_v37  ;;  %1456 = vmatprep.mubr.msk.bf16.mxu1 %vm1608_vm0, %v1607_v5  ;;  %v1168_v62 = vsel %vm1167_vm11, %v1162_v61, %v1164_v53 }
  0xbd   : > { %1385 = vmatmul.mubr.msk.bf16.vlgmr.msra.gmra.mrb[16].mxu0 %vm200_vm5, %v1384_v38  ;;  %1460 = vmatprep.subr.bf16.mxu1 %v1607_v5  ;;  %v1166_v52 = vpop.permute.xlu0 %1165  ;;  %v1174_v1 = vand.u32 %v1168_v62, %v1740_v54 }
  0xbe   : > { %808 = vmatpush1.bf16.msra.mxu0 %v799_v41  ;;  %839 = vmatprep.mubr.bf16.mxu0 %v1611_v21  ;;  %v1169_v58 = vsel %vm1167_vm11, %v1164_v53, %v1166_v52  ;;  %v1180_v63 = vand.u32 %v1166_v52, %v1740_v54 }
  0xbf   : > { %932 = vmatprep.subr.bf16.mxu0 %v927_v42  ;;  %v1177_v60 = vand.u32 %v1169_v58, %v1740_v54 }
  0xc3   : > { %1457 = vmatmul.mubr.msk.bf16.vlgmr.msra.gmra.mrb[20].mxu1 %vm200_vm5, %v1387_v47 }
  0xc4   : > { %1461 = vmatpush3.bf16.msra.mxu1 %v930_v46  ;;  %1462 = vmatprep.mubr.msk.bf16.mxu1 %vm1608_vm0, %v1607_v5 }
  0xc5   : > { %1388 = vmatmul.mubr.msk.bf16.vlgmr.msra.gmra.mrb[20].mxu0 %vm200_vm5, %v1387_v47  ;;  %1466 = vmatprep.subr.bf16.mxu1 %v1607_v5 }
  0xc6   : > { %933 = vmatpush1.bf16.msra.mxu0 %v924_v50  ;;  %964 = vmatprep.mubr.bf16.mxu0 %v1611_v21 }
  0xc7   : > { %1057 = vmatprep.subr.bf16.mxu0 %v1052_v51 }
  0xcb   : > { %1463 = vmatmul.mubr.msk.bf16.vlgmr.msra.gmra.mrb[24].mxu1 %vm200_vm5, %v1390_v57 }
  0xcc   : > { %1467 = vmatpush3.bf16.msra.mxu1 %v1055_v56  ;;  %1468 = vmatprep.mubr.msk.bf16.mxu1 %vm1608_vm0, %v1607_v5 }
  0xcd   : > { %1391 = vmatmul.mubr.msk.bf16.vlgmr.msra.gmra.mrb[24].mxu0 %vm200_vm5, %v1390_v57  ;;  %1472 = vmatprep.subr.bf16.mxu1 %v1607_v5 }
  0xce   : > { %1058 = vmatpush1.bf16.msra.mxu0 %v1049_v59  ;;  %1089 = vmatprep.mubr.bf16.mxu0 %v1611_v21 }
  0xcf   : > { %1182 = vmatprep.subr.bf16.mxu0 %v1177_v60 }
  0xd3   : > { %1469 = vmatmul.mubr.msk.bf16.vlgmr.msra.gmra.mrb[28].mxu1 %vm200_vm5, %v1393_v0 }
  0xd4   : > { %1473 = vmatpush3.bf16.msra.mxu1 %v1180_v63  ;;  %1474 = vmatprep.mubr.msk.bf16.mxu1 %vm1608_vm0, %v1607_v5 }
  0xd5   : > { %1394 = vmatmul.mubr.msk.bf16.vlgmr.msra.gmra.mrb[28].mxu0 %vm200_vm5, %v1393_v0 }
  0xd6   : > { %1183 = vmatpush1.bf16.msra.mxu0 %v1174_v1  ;;  %1214 = vmatprep.mubr.bf16.mxu0 %v1611_v21 }
  0xdb   : > { %1475 = vmatmul.mubr.msk.bf16.vlgmr.msra.gmra.mrb[32].mxu1 %vm200_vm5, %v1396_v2 }
  0xdd   : > { %1397 = vmatmul.mubr.msk.bf16.vlgmr.msra.gmra.mrb[32].mxu0 %vm200_vm5, %v1396_v2 }
 0x16e   : > { %v292_v54 = vpop.f32.mrb[0].mxu1 }
 0x16f   : > { %v1428_v3 = vpop.f32.mrb[1].mxu1 }
 0x170   : > { %v251_v4 = vpop.f32.mrb[0].mxu0  ;;  %v295_v6 = vpop.f32.mrb[2].mxu1 }
 0x171   : > { %v253_v7 = vpop.f32.mrb[1].mxu0  ;;  %v1429_v8 = vpop.f32.mrb[3].mxu1 }
 0x172   : > { %v255_v5 = vpop.f32.mrb[2].mxu0 }
 0x173   : > { %v256_v9 = vpop.f32.mrb[3].mxu0 }
 0x176   : > { %v385_v10 = vpop.f32.mrb[4].mxu1 }
 0x177   : > { %v386_v11 = vadd.f32 %v385_v10, %v292_v54  ;;  %v1434_v12 = vpop.f32.mrb[5].mxu1 }
 0x178   : > { %v344_v21 = vpop.f32.mrb[4].mxu0  ;;  %v388_v13 = vpop.f32.mrb[6].mxu1 }
 0x179   : > { %v345_v14 = vadd.f32 %v344_v21, %v251_v4  ;;  %v346_v15 = vpop.f32.mrb[5].mxu0  ;;  %v1435_v16 = vpop.f32.mrb[7].mxu1 }
 0x17a   : > { %v347_v17 = vadd.f32 %v346_v15, %v253_v7  ;;  %v348_v18 = vpop.f32.mrb[6].mxu0 }
 0x17b   : > { %v349_v19 = vpop.f32.mrb[7].mxu0 }
 0x17e   : > { %v507_v20 = vpop.f32.mrb[8].mxu1 }
 0x17f   : > { %v515_v22 = vadd.f32 %v507_v20, %v386_v11  ;;  %v1440_v23 = vpop.f32.mrb[9].mxu1 }
 0x180   : > { %v466_v24 = vpop.f32.mrb[8].mxu0  ;;  %v510_v25 = vpop.f32.mrb[10].mxu1 }
 0x181   : > { %v513_v26 = vadd.f32 %v466_v24, %v345_v14  ;;  %v468_v27 = vpop.f32.mrb[9].mxu0  ;;  %v1441_v28 = vpop.f32.mrb[11].mxu1 }
 0x182   : > { %v514_v29 = vadd.f32 %v468_v27, %v347_v17  ;;  %v470_v30 = vpop.f32.mrb[10].mxu0  ;;  %v1270_v24 = vpop.permute.xlu0 %1269 }
 0x183   : > { %v471_v31 = vpop.f32.mrb[11].mxu0 }
 0x186   : > { %v632_v32 = vpop.f32.mrb[12].mxu1 }
 0x187   : > { %v640_v33 = vadd.f32 %v632_v32, %v515_v22  ;;  %v1446_v34 = vpop.f32.mrb[13].mxu1 }
 0x188   : > { %v591_v35 = vpop.f32.mrb[12].mxu0  ;;  %v635_v36 = vpop.f32.mrb[14].mxu1 }
 0x189   : > { %v638_v37 = vadd.f32 %v591_v35, %v513_v26  ;;  %v593_v38 = vpop.f32.mrb[13].mxu0  ;;  %v1447_v39 = vpop.f32.mrb[15].mxu1 }
 0x18a   : > { %v639_v40 = vadd.f32 %v593_v38, %v514_v29  ;;  %v595_v41 = vpop.f32.mrb[14].mxu0 }
 0x18b   : > { %v596_v42 = vpop.f32.mrb[15].mxu0 }
 0x18e   : > { %v757_v43 = vpop.f32.mrb[16].mxu1 }
 0x18f   : > { %v765_v44 = vadd.f32 %v757_v43, %v640_v33  ;;  %v1452_v45 = vpop.f32.mrb[17].mxu1 }
 0x190   : > { %v716_v46 = vpop.f32.mrb[16].mxu0  ;;  %v760_v47 = vpop.f32.mrb[18].mxu1 }
 0x191   : > { %v763_v48 = vadd.f32 %v716_v46, %v638_v37  ;;  %v718_v49 = vpop.f32.mrb[17].mxu0  ;;  %v1453_v50 = vpop.f32.mrb[19].mxu1 }
 0x192   : > { %v764_v51 = vadd.f32 %v718_v49, %v639_v40  ;;  %v720_v52 = vpop.f32.mrb[18].mxu0 }
 0x193   : > { %v721_v53 = vpop.f32.mrb[19].mxu0 }
 0x196   : > { %v882_v55 = vpop.f32.mrb[20].mxu1 }
 0x197   : > { %v890_v56 = vadd.f32 %v882_v55, %v765_v44  ;;  %v1458_v57 = vpop.f32.mrb[21].mxu1 }
 0x198   : > { %v841_v58 = vpop.f32.mrb[20].mxu0  ;;  %v885_v59 = vpop.f32.mrb[22].mxu1 }
 0x199   : > { %v888_v60 = vadd.f32 %v841_v58, %v763_v48  ;;  %v843_v61 = vpop.f32.mrb[21].mxu0  ;;  %v1459_v62 = vpop.f32.mrb[23].mxu1 }
 0x19a   : > { %v889_v63 = vadd.f32 %v843_v61, %v764_v51  ;;  %v845_v0 = vpop.f32.mrb[22].mxu0 }
 0x19b   : > { %v846_v1 = vpop.f32.mrb[23].mxu0 }
 0x19e   : > { %v1007_v2 = vpop.f32.mrb[24].mxu1 }
 0x19f   : > { %v1015_v54 = vadd.f32 %v1007_v2, %v890_v56  ;;  %v1464_v3 = vpop.f32.mrb[25].mxu1 }
 0x1a0   : > { %v966_v4 = vpop.f32.mrb[24].mxu0  ;;  %v1010_v6 = vpop.f32.mrb[26].mxu1 }
 0x1a1   : > { %v1013_v7 = vadd.f32 %v966_v4, %v888_v60  ;;  %v968_v8 = vpop.f32.mrb[25].mxu0  ;;  %v1465_v5 = vpop.f32.mrb[27].mxu1 }
 0x1a2   : > { %v1014_v9 = vadd.f32 %v968_v8, %v889_v63  ;;  %v970_v10 = vpop.f32.mrb[26].mxu0 }
 0x1a3   : > { %v971_v11 = vpop.f32.mrb[27].mxu0 }
 0x1a6   : > { %v1132_v12 = vpop.f32.mrb[28].mxu1 }
 0x1a7   : > { %v1140_v21 = vadd.f32 %v1132_v12, %v1015_v54  ;;  %v1470_v13 = vpop.f32.mrb[29].mxu1 }
 0x1a8   : > { %v1091_v14 = vpop.f32.mrb[28].mxu0  ;;  %v1135_v15 = vpop.f32.mrb[30].mxu1 }
 0x1a9   : > { %v1138_v16 = vadd.f32 %v1091_v14, %v1013_v7  ;;  %v1093_v17 = vpop.f32.mrb[29].mxu0  ;;  %v1471_v18 = vpop.f32.mrb[31].mxu1 }
 0x1aa   : > { %v1139_v19 = vadd.f32 %v1093_v17, %v1014_v9  ;;  %v1095_v20 = vpop.f32.mrb[30].mxu0 }
 0x1ab   : > { %v1096_v22 = vpop.f32.mrb[31].mxu0 }
 0x1ae   : > { %v1257_v23 = vpop.f32.mrb[32].mxu1 }
 0x1af   : > { %v1265_v25 = vadd.f32 %v1257_v23, %v1140_v21  ;;  %v1476_v26 = vpop.f32.mrb[33].mxu1 }
 0x1b0   : > { %v1216_v27 = vpop.f32.mrb[32].mxu0  ;;  %v1260_v28 = vpop.f32.mrb[34].mxu1 }
 0x1b1   : > { %v1263_v29 = vadd.f32 %v1216_v27, %v1138_v16  ;;  %v1274_v30 = vadd.f32 %v1270_v24, %v1265_v25  ;;  %v1218_v31 = vpop.f32.mrb[33].mxu0  ;;  %v1477_v32 = vpop.f32.mrb[35].mxu1 }
 0x1b2   : > { %v1264_v33 = vadd.f32 %v1218_v31, %v1139_v19  ;;  %v1220_v34 = vpop.f32.mrb[34].mxu0 }
 0x1b3   : > { %v1272_v35 = vadd.f32 %v1270_v24, %v1263_v29  ;;  %v1277_v36 = vmax.f32 %v1274_v30, 0.0  ;;  %v1221_v37 = vpop.f32.mrb[35].mxu0 }
 0x1b4   : > { %v1273_v38 = vadd.f32 %v1270_v24, %v1264_v33 }
 0x1b5   : > { %v1275_v39 = vmax.f32 %v1272_v35, 0.0  ;;  %v1405_v40 = vpack.c.bf16 %v1277_v36, %v1277_v36 }
 0x1b6   : > { %v1276_v41 = vmax.f32 %v1273_v38, 0.0 }
 0x1b7   : > { %1293 = vst.msk [vmem:[%s163_s24 + $0x8] sm:$0xf] %vm1292_vm12, %v1405_v40 }
 0x1b8   : > { %v1404_v42 = vpack.c.bf16 %v1276_v41, %v1275_v39 }
 0x1ba   : > { %1291 = vst [vmem:[%s163_s24] sm:$0xff] %v1404_v42 }
 0x1bb   : > { %1555 = shalt.err (!%p1552_p3)
}
 0x1bc   : > { %s1556_s6 = scalar_lea.hbm %s1870_s28, 192  ;;  %s1560_s9 = scalar_lea.hbm %s1917_s3, 1152 }
 0x1bd   : > { %p1557_p4 = scmp.ne.s32.totalorder %s1870_s28, %s1556_s6  ;;  %p1561_p9 = scmp.lt.u32.totalorder %s1870_s28, %s1917_s3 }
 0x1be   : > { %p1562_p10 = scmp.lt.u32.totalorder %s1560_s9, %s1556_s6  ;;  %p1564_p12 = scmp.lt.u32.totalorder %s1556_s6, %s1870_s28 }
 0x1bf   : > { %p1558_p7 = pnand %p1557_p4, %p1678_p5 }
 0x1c0   : > { %p1563_p11 = por %p1562_p10, %p1561_p9 }
 0x1c1   : > { %p1559_p8 = pneg %p1558_p7 }
 0x1c2   : > { %p1565_p13 = por %p1564_p12, %p1563_p11 }
 0x1c4   : > { %p1566_p0 = pnand %p1565_p13, %p1559_p8 }
 0x1c6   : > { %1569 = shalt.err (!%p1566_p0)
}
 0x1c7   : > { %1481 = dma.vmem_to_hbm [thread:$0]  (%p1678_p5), %s1872_s25, 192, %s1870_s28, %s1295_s16  }
 0x1c8 PF: > { %p1487_p1 = scmp.ge.s32.totalorder %s1604_s15, 2  ;;  %s1321_s17 = sand.u32 1, %s1592_s12  }
 0x1c9   : > { %s1322_s19 = scalar_lea.sflag [#allocation3], %s1321_s17 }
 0x1ca   : > { %p1484_p2 = pnand %p1487_p1, %p1682_p6 }
 0x1cc   : > { %1587 = dma.done.wait (!%p1484_p2), %s1322_s19, 192  }
 0x1cd   : > { %1589 = vsyncadd (!%p1484_p2), %s1322_s19, 4294967104  ;;  %p13_p3 = scmp.ge.s32.totalorder %s1665_s18, 8   ;;  %s1920_s12 = smov %s1596_s13 }
 0x1ce   : > { %s1921_s13 = smov %s1600_s14  ;;  %s1922_s14 = smov %s1676_s21 }
 0x1cf   : > { %s1923_s15 = smov %s1665_s18  ;;  %15 = sbr.rel (!%p13_p3) target bundleno = 3 (0x3), region = 75 }
 0x1d6   :  { %1327 = vsyncpa [#allocation3], 1 }
 0x1d7   :  { %1329 = vsyncpa [#allocation3 + $0x1], 1 }

</bundles_post_ra>
